<compile_context>
chip_gen: v7x
topology: tpu7x:2x2x1
jax: 0.10.0
libtpu: 0.0.40
codegen_flags: <defaults>
</compile_context>

<pallas_src>
import functools

import jax
import jax.numpy as jnp
from jax.experimental import pallas as pl
from jax.experimental.pallas import tpu as pltpu

BN_EPS = 1e-5
LANE = 128
SUBLANE = 8


# ----------------------------------------------------------------------------- kernel
def classifier_kernel(x_ref, w1_ref, b1_ref, w2_ref, b2_ref, out_ref):
    # hidden = relu(x @ W1' + b1')   -- BN already folded into W1'/b1'
    x = x_ref[...].astype(jnp.bfloat16)                     # bf16 MXU operands
    h = jnp.dot(x, w1_ref[...], preferred_element_type=jnp.float32) + b1_ref[...]
    h = jnp.maximum(h, 0.0)                                 # ReLU (f32 VPU)
    # dropout: identity in eval mode
    # out = hidden @ W2 + b2  (hidden & output dims lane-padded to multiples of 128)
    out_ref[...] = (jnp.dot(h.astype(jnp.bfloat16), w2_ref[...],
                            preferred_element_type=jnp.float32)
                    + b2_ref[...])


# ----------------------------------------------------------------------------- wrapper
def _round_up(x, m):
    return pl.cdiv(x, m) * m


def fold_params(params):
    """Constant-fold BatchNorm + b1 into W1/b1, cast weights to bf16, and
    zero-pad the hidden and output feature dims to multiples of 128 lanes."""
    w1, b1, gamma, beta, mean, var, w2, b2 = params
    scale = gamma * jax.lax.rsqrt(var + BN_EPS)             # (1, nb_units)
    w1_f = (w1 * scale).astype(jnp.float32)                 # (F_in, nb_units)
    b1_f = (b1 - mean) * scale + beta                       # (1, nb_units) f32

    f_in, nb_units = w1_f.shape
    nb_class = w2.shape[1]
    nu_pad = _round_up(nb_units, LANE)                      # lane-dense hidden dim
    nc_pad = _round_up(nb_class, LANE)                      # lane-dense output dim

    # Pad hidden dim: padded hidden units are 0 (zero W1 cols + zero bias) -> ReLU 0
    # -> multiply zero W2 rows -> contribute nothing.  Semantics preserved.
    w1_p = jnp.zeros((f_in, nu_pad), jnp.bfloat16)
    w1_p = w1_p.at[:, :nb_units].set(w1_f.astype(jnp.bfloat16))
    b1_p = jnp.zeros((1, nu_pad), jnp.float32).at[:, :nb_units].set(b1_f)

    w2_p = jnp.zeros((nu_pad, nc_pad), jnp.bfloat16)
    w2_p = w2_p.at[:nb_units, :nb_class].set(w2.astype(jnp.bfloat16))
    b2_p = jnp.zeros((1, nc_pad), jnp.float32).at[:, :nb_class].set(b2)
    return w1_p, b1_p, w2_p, b2_p, nb_class


@functools.partial(jax.jit, static_argnames=("nb_class", "block_b"))
def classifier_forward(x, w1_p, b1_p, w2_p, b2_p, *, nb_class, block_b=512):
    """x: [B, F_in] f32 -> [B, nb_class] f32."""
    B, f_in = x.shape
    nu_pad = w1_p.shape[1]
    nc_pad = w2_p.shape[1]

    # Batch tile: whole (sublane-rounded) batch if small, else 512-row blocks.
    tb = min(block_b, _round_up(B, SUBLANE))
    b_pad = _round_up(B, tb)
    if b_pad != B:
        x = jnp.pad(x, ((0, b_pad - B), (0, 0)))

    out = pl.pallas_call(
        classifier_kernel,
        out_shape=jax.ShapeDtypeStruct((b_pad, nc_pad), jnp.float32),
        grid=(b_pad // tb,),
        in_specs=[
            pl.BlockSpec((tb, f_in), lambda i: (i, 0)),          # x : tiled by batch
            pl.BlockSpec((f_in, nu_pad), lambda i: (0, 0)),      # W1': resident
            pl.BlockSpec((1, nu_pad), lambda i: (0, 0)),         # b1': resident
            pl.BlockSpec((nu_pad, nc_pad), lambda i: (0, 0)),    # W2 : resident
            pl.BlockSpec((1, nc_pad), lambda i: (0, 0)),         # b2 : resident
        ],
        out_specs=pl.BlockSpec((tb, nc_pad), lambda i: (i, 0)),
        compiler_params=pltpu.CompilerParams(
            dimension_semantics=("parallel",)),                  # v7x: both TCs
    )(x, w1_p, b1_p, w2_p, b2_p)

    return out[:B, :nb_class]


# ----------------------------------------------------------------------------- params / references
def init_params(key, in_features, nb_units, nb_class):
    ks = jax.random.split(key, 8)
    # Linear 1: PyTorch weight is [nb_units, in_features]; stored transposed.
    w1 = jax.random.uniform(ks[0], (in_features, nb_units), jnp.float32,
                            -1.0, 1.0) / jnp.sqrt(in_features)
    b1 = jax.random.uniform(ks[1], (1, nb_units), jnp.float32,
                            -1.0, 1.0) / jnp.sqrt(in_features)
    # BatchNorm1d affine params / running stats.
    gamma = 1.0 + 0.1 * jax.random.normal(ks[2], (1, nb_units), jnp.float32)
    beta = 0.1 * jax.random.normal(ks[3], (1, nb_units), jnp.float32)
    mean = 0.05 * jax.random.normal(ks[4], (1, nb_units), jnp.float32)
    var = jnp.abs(1.0 + 0.1 * jax.random.normal(ks[5], (1, nb_units), jnp.float32))
    # Linear 2.
    w2 = jax.random.uniform(ks[6], (nb_units, nb_class), jnp.float32,
                            -1.0, 1.0) / jnp.sqrt(nb_units)
    b2 = jax.random.uniform(ks[7], (1, nb_class), jnp.float32,
                            -1.0, 1.0) / jnp.sqrt(nb_units)
    return (w1, b1, gamma, beta, mean, var, w2, b2)


def reference_forward_f32(x, params):
    """Pure-JAX full-f32 reference with the original (unfolded) eval semantics."""
    w1, b1, gamma, beta, mean, var, w2, b2 = params
    h = x @ w1 + b1
    h = (h - mean) * (gamma / jnp.sqrt(var + BN_EPS)) + beta
    h = jnp.maximum(h, 0.0)
    return h @ w2 + b2


def reference_forward_folded(x, w1_p, b1_p, w2_p, b2_p, nb_class):
    """Pure-JAX reference mirroring the kernel's numerics (folded/padded bf16)."""
    h = jnp.dot(x.astype(jnp.bfloat16), w1_p,
                preferred_element_type=jnp.float32) + b1_p
    h = jnp.maximum(h, 0.0)
    out = jnp.dot(h.astype(jnp.bfloat16), w2_p,
                  preferred_element_type=jnp.float32) + b2_p
    return out[:, :nb_class]


# ----------------------------------------------------------------------------- main
if __name__ == "__main__":
    batch = 8
    in_features = 32   # LazyLinear infers this from the input
    nb_units = 32
    nb_class = 4

    key = jax.random.PRNGKey(0)
    kx, kp = jax.random.split(key)
    x = jax.random.normal(kx, (batch, in_features), jnp.float32)
    params = init_params(kp, in_features, nb_units, nb_class)

    w1_p, b1_p, w2_p, b2_p, nbc = fold_params(params)

    out = classifier_forward(x, w1_p, b1_p, w2_p, b2_p, nb_class=nbc)
    out = jax.block_until_ready(out)
    assert out.shape == (batch, nb_class)

    # Bit-level sanity: kernel vs. pure-JAX with identical folded/padded bf16 numerics.
    ref_folded = reference_forward_folded(x, w1_p, b1_p, w2_p, b2_p, nbc)
    assert jnp.allclose(out, ref_folded, atol=1e-4, rtol=1e-4), \
        "mismatch vs folded bf16 JAX reference"

    # Semantic sanity: kernel vs. original full-f32 eval-mode module math
    # (loose tolerance -- bf16 weight quantization is intentional).
    ref_f32 = reference_forward_f32(x, params)
    assert jnp.allclose(out, ref_f32, atol=5e-2, rtol=5e-2), \
        "mismatch vs full-f32 reference"

    print("KERNEL_OK")
</pallas_src>

<mosaic_0001>
module attributes {stable_mosaic.version = 11 : i64} {
  func.func @classifier_kernel(%arg0: i32, %arg1: memref<8x32xf32, #tpu.memory_space<vmem>>, %arg2: memref<32x128xbf16, #tpu.memory_space<vmem>>, %arg3: memref<1x128xf32, #tpu.memory_space<vmem>>, %arg4: memref<128x128xbf16, #tpu.memory_space<vmem>>, %arg5: memref<1x128xf32, #tpu.memory_space<vmem>>, %arg6: memref<8x128xf32, #tpu.memory_space<vmem>>) attributes {dimension_semantics = [#tpu.dimension_semantics<parallel>], iteration_bounds = array<i64: 1>, scalar_prefetch = 0 : i64, scratch_operands = 0 : i64, tpu.core_type = #tpu.core_type<tc>, window_params = [{transform_indices = @transform_0, window_bounds = array<i64: 8, 32>}, {pipeline_mode = #tpu.pipeline_mode<synchronous>, transform_indices = @transform_1, window_bounds = array<i64: 32, 128>}, {pipeline_mode = #tpu.pipeline_mode<synchronous>, transform_indices = @transform_2, window_bounds = array<i64: 1, 128>}, {pipeline_mode = #tpu.pipeline_mode<synchronous>, transform_indices = @transform_3, window_bounds = array<i64: 128, 128>}, {pipeline_mode = #tpu.pipeline_mode<synchronous>, transform_indices = @transform_4, window_bounds = array<i64: 1, 128>}, {transform_indices = @transform_5, window_bounds = array<i64: 8, 128>}]} {
    %c0 = arith.constant 0 : index
    %c0_0 = arith.constant 0 : index
    %0 = vector.load %arg1[%c0, %c0_0] : memref<8x32xf32, #tpu.memory_space<vmem>>, vector<8x32xf32>
    %1 = arith.truncf %0 : vector<8x32xf32> to vector<8x32xbf16>
    %c0_1 = arith.constant 0 : index
    %c0_2 = arith.constant 0 : index
    %2 = vector.load %arg2[%c0_1, %c0_2] : memref<32x128xbf16, #tpu.memory_space<vmem>>, vector<32x128xbf16>
    %cst = arith.constant dense<0.000000e+00> : vector<8x128xf32>
    %3 = tpu.matmul %1, %2, %cst {dimension_numbers = #tpu.dot_dimension_numbers<[1], [0], [0], [1], [0, 0, 1, 1], [], []>} : vector<8x32xbf16>, vector<32x128xbf16>, vector<8x128xf32> -> vector<8x128xf32>
    %c0_3 = arith.constant 0 : index
    %c0_4 = arith.constant 0 : index
    %4 = vector.load %arg3[%c0_3, %c0_4] : memref<1x128xf32, #tpu.memory_space<vmem>>, vector<1x128xf32>
    %5 = vector.broadcast %4 : vector<1x128xf32> to vector<8x128xf32>
    %6 = arith.addf %3, %5 : vector<8x128xf32>
    %cst_5 = arith.constant 0.000000e+00 : f32
    %7 = vector.broadcast %cst_5 : f32 to vector<8x128xf32>
    %8 = arith.maximumf %6, %7 : vector<8x128xf32>
    %9 = arith.truncf %8 : vector<8x128xf32> to vector<8x128xbf16>
    %c0_6 = arith.constant 0 : index
    %c0_7 = arith.constant 0 : index
    %10 = vector.load %arg4[%c0_6, %c0_7] : memref<128x128xbf16, #tpu.memory_space<vmem>>, vector<128x128xbf16>
    %cst_8 = arith.constant dense<0.000000e+00> : vector<8x128xf32>
    %11 = tpu.matmul %9, %10, %cst_8 {dimension_numbers = #tpu.dot_dimension_numbers<[1], [0], [0], [1], [0, 0, 1, 1], [], []>} : vector<8x128xbf16>, vector<128x128xbf16>, vector<8x128xf32> -> vector<8x128xf32>
    %c0_9 = arith.constant 0 : index
    %c0_10 = arith.constant 0 : index
    %12 = vector.load %arg5[%c0_9, %c0_10] : memref<1x128xf32, #tpu.memory_space<vmem>>, vector<1x128xf32>
    %13 = vector.broadcast %12 : vector<1x128xf32> to vector<8x128xf32>
    %14 = arith.addf %11, %13 : vector<8x128xf32>
    %c0_11 = arith.constant 0 : index
    %c0_12 = arith.constant 0 : index
    %15 = vector.load %arg6[%c0_11, %c0_12] : memref<8x128xf32, #tpu.memory_space<vmem>>, vector<8x128xf32>
    tpu.vector_store %arg6[%c0_11, %c0_12], %14 {strides = array<i32>} : memref<8x128xf32, #tpu.memory_space<vmem>>, vector<8x128xf32>,
    return
  }
  func.func @transform_0(%arg0: i32) -> (i32, i32) {
    %c0_i32 = arith.constant 0 : i32
    %c0_i32_0 = arith.constant 0 : i32
    return %arg0, %c0_i32 : i32, i32
  }
  func.func @transform_1(%arg0: i32) -> (i32, i32) {
    %c0_i32 = arith.constant 0 : i32
    %c0_i32_0 = arith.constant 0 : i32
    %c0_i32_1 = arith.constant 0 : i32
    return %c0_i32, %c0_i32_0 : i32, i32
  }
  func.func @transform_2(%arg0: i32) -> (i32, i32) {
    %c0_i32 = arith.constant 0 : i32
    %c0_i32_0 = arith.constant 0 : i32
    %c0_i32_1 = arith.constant 0 : i32
    return %c0_i32, %c0_i32_0 : i32, i32
  }
  func.func @transform_3(%arg0: i32) -> (i32, i32) {
    %c0_i32 = arith.constant 0 : i32
    %c0_i32_0 = arith.constant 0 : i32
    %c0_i32_1 = arith.constant 0 : i32
    return %c0_i32, %c0_i32_0 : i32, i32
  }
  func.func @transform_4(%arg0: i32) -> (i32, i32) {
    %c0_i32 = arith.constant 0 : i32
    %c0_i32_0 = arith.constant 0 : i32
    %c0_i32_1 = arith.constant 0 : i32
    return %c0_i32, %c0_i32_0 : i32, i32
  }
  func.func @transform_5(%arg0: i32) -> (i32, i32) {
    %c0_i32 = arith.constant 0 : i32
    %c0_i32_0 = arith.constant 0 : i32
    return %arg0, %c0_i32 : i32, i32
  }
}

</mosaic_0001>

<bundles_post_ra>
// kernel: classifier_forward.1
= control target key start
LH: loop header
LB: loop body
LE: loop exit
PB: predicated region body
PF: predicated region fallthrough
CT: control target
= control target key end

     0   :  { %10 = vsyncpa [#allocation3], 0  ;;  %s477_s0 = inlined_call_operand.hbm [shape: f32[8,32], index: 0, kind: input, shape index: {}]   ;;  %s478_s1 = inlined_call_operand.hbm [shape: bf16[32,128], index: 1, kind: input, shape index: {}]   ;;  %s479_s2 = inlined_call_operand.vmem [shape: f32[1,128], index: 2, kind: input, shape index: {}]   ;;  %s480_s3 = inlined_call_operand.hbm [shape: bf16[128,128], index: 3, kind: input, shape index: {}]   ;;  %s481_s4 = inlined_call_operand.vmem [shape: f32[1,128], index: 4, kind: input, shape index: {}]   ;;  %s482_s5 = inlined_call_operand.vmem [shape: f32[8,128], index: 5, kind: output, shape index: {}]  }
   0x1   :  { %11 = vsyncpa [#allocation5], 0  ;;  %s389_s18 = smov [#allocation4]   ;;  %s319_s22 = scalar_lea.hbm %s478_s1, 256 }
   0x2   :  { %s27_s19 = sshll.u32 %s389_s18, 4  ;;  %p320_p0 = scmp.ne.s32.totalorder %s478_s1, %s319_s22  ;;  %s28_s19 = int_to_ptr.vmem [resolvable:$true] %s27_s19 }
   0x3   :  { %p323_p1 = scmp.lt.u32.totalorder %s319_s22, %s478_s1 }
   0x5   :  { %p325_p2 = pnand %p323_p1, %p320_p0 }
   0x7   :  { %328 = shalt.err (!%p325_p2)
}
   0x8   :  { %s329_s27 = scalar_lea.vmem %s28_s19, 256  ;;  %p334_p4 = scmp.lt.s32.totalorder %s28_s19, %s28_s19 }
   0x9   :  { %p330_p3 = scmp.ne.s32.totalorder %s28_s19, %s329_s27  ;;  %p335_p5 = scmp.lt.s32.totalorder %s329_s27, %s329_s27 }
   0xb   :  { %p336_p6 = por %p335_p5, %p334_p4 }
   0xd   :  { %p337_p7 = pnand %p336_p6, %p330_p3 }
   0xf   :  { %340 = shalt.err (!%p337_p7)
}
  0x10   :  { %s390_s28 = smov 64   ;;  %s391_s29 = smov 4  }
  0x11   :  { %33 = dma.hbm_to_vmem [thread:$0]  %s478_s1, 256, %s28_s19, [#allocation5], %s390_s28, %s390_s28, %s391_s29  }
  0x12   :  { %s392_s7 = smov [#allocation2]   ;;  %s393_s9 = smov [#allocation6]  }
  0x13   :  { %s18_s8 = sshll.u32 %s392_s7, 4  ;;  %s41_s10 = sshll.u32 %s393_s9, 4  ;;  %s19_s8 = int_to_ptr.vmem [resolvable:$true] %s18_s8  ;;  %s42_s10 = int_to_ptr.vmem [resolvable:$true] %s41_s10 }
  0x14   :  { %s341_s13 = scalar_lea.hbm %s477_s0, 128 }
  0x15   :  { %p342_p8 = scmp.ne.s32.totalorder %s477_s0, %s341_s13  ;;  %p345_p9 = scmp.lt.u32.totalorder %s341_s13, %s477_s0 }
  0x17   :  { %p347_p10 = pnand %p345_p9, %p342_p8 }
  0x19   :  { %350 = shalt.err (!%p347_p10)
}
  0x1a   :  { %s351_s1 = scalar_lea.vmem %s19_s8, 128  ;;  %p356_p12 = scmp.lt.s32.totalorder %s19_s8, %s19_s8 }
  0x1b   :  { %p352_p11 = scmp.ne.s32.totalorder %s19_s8, %s351_s1  ;;  %p357_p13 = scmp.lt.s32.totalorder %s351_s1, %s351_s1 }
  0x1d   :  { %p358_p0 = por %p357_p13, %p356_p12 }
  0x1f   :  { %p359_p1 = pnand %p358_p0, %p352_p11 }
  0x21   :  { %362 = shalt.err (!%p359_p1)
}
  0x22   :  { %21 = dma.hbm_to_vmem [thread:$0]  %s477_s0, 128, %s19_s8, [#allocation3]  }
  0x23   :  { %s363_s22 = scalar_lea.hbm %s480_s3, 1024 }
  0x24   :  { %p364_p2 = scmp.ne.s32.totalorder %s480_s3, %s363_s22  ;;  %p367_p3 = scmp.lt.u32.totalorder %s363_s22, %s480_s3 }
  0x26   :  { %p369_p4 = pnand %p367_p3, %p364_p2 }
  0x28   :  { %372 = shalt.err (!%p369_p4)
}
  0x29   :  { %s373_s27 = scalar_lea.vmem %s42_s10, 1024  ;;  %p378_p6 = scmp.lt.s32.totalorder %s42_s10, %s42_s10 }
  0x2a   :  { %p374_p5 = scmp.ne.s32.totalorder %s42_s10, %s373_s27  ;;  %p379_p7 = scmp.lt.s32.totalorder %s373_s27, %s373_s27 }
  0x2c   :  { %p380_p8 = por %p379_p7, %p378_p6 }
  0x2e   :  { %p381_p9 = pnand %p380_p8, %p374_p5 }
  0x30   :  { %384 = shalt.err (!%p381_p9)
}
  0x31   :  { %47 = dma.hbm_to_vmem [thread:$0]  %s480_s3, 1024, %s42_s10, [#allocation5], %s390_s28, %s390_s28, %s391_s29  }
  0x32   :  { %385 = dma.done.wait [#allocation3], 128  }
  0x33   :  { %386 = vsyncadd [#allocation3], 4294967168 }
  0x34   :  { %387 = dma.done.wait [#allocation5], 1280  }
  0x35   :  { %388 = vsyncadd [#allocation5], 4294966016  ;;  %v394_v0 = vmov 0.0   ;;  %vm395_vm0 = vmmov 0   ;;  %v309_v1 = vld [vmem:[#allocation4] sm:$0xff]   ;;  %v310_v2 = vld [vmem:[#allocation4 + $0x8] sm:$0xff]  }
  0x36   :  { %274 = vmatprep.subr.bf16.mxu0 %v394_v0  ;;  %278 = vmatprep.mubr.msk.bf16.mxu0 %vm395_vm0, %v394_v0  ;;  %v60_v3 = vld [vmem:[#allocation2] sm:$0xff]  ;;  %v311_v4 = vld [vmem:[#allocation6] sm:$0xff]   ;;  %vm85_vm1 = vcmask 261120   ;;  %v313_v7 = vld [vmem:[#allocation6 + $0x10] sm:$0xff]  }
  0x37   :  { %282 = vmatprep.subr.bf16.mxu1 %v394_v0  ;;  %298 = vmatprep.mubr.msk.bf16.mxu1 %vm395_vm0, %v394_v0  ;;  %v61_v5 = vpack.c.bf16 %v60_v3, %v60_v3  ;;  %v312_v6 = vld [vmem:[#allocation6 + $0x8] sm:$0xff]   ;;  %v314_v8 = vld [vmem:[#allocation6 + $0x18] sm:$0xff]   ;;  %v315_v9 = vld [vmem:[#allocation6 + $0x20] sm:$0xff]  }
  0x38   :  { %275 = vmatpush3.bf16.msra.mxu0 %v309_v1  ;;  %283 = vmatpush3.bf16.msra.mxu1 %v311_v4  ;;  %v316_v10 = vld [vmem:[#allocation6 + $0x28] sm:$0xff]   ;;  %v317_v11 = vld [vmem:[#allocation6 + $0x30] sm:$0xff]   ;;  %v318_v12 = vld [vmem:[#allocation6 + $0x38] sm:$0xff]  }
  0x39   :  { %276 = vmatprep.subr.bf16.mxu0 %v394_v0  ;;  %284 = vmatprep.subr.bf16.mxu1 %v394_v0  ;;  %v249_v13 = vld [vmem:[%s479_s2] ss:$0 sm:$0xff] }
  0x3a   :  { %v253_v21 = vld [vmem:[%s481_s4] ss:$0 sm:$0xff] }
  0x3c   :  { %277 = vmatpush3.bf16.msra.mxu0 %v310_v2  ;;  %285 = vmatpush3.bf16.msra.mxu1 %v312_v6 }
  0x3d   :  { %286 = vmatprep.subr.bf16.mxu1 %v394_v0 }
  0x3f   :  { %279 = vmatmul.mubr.msk.bf16.vlgmr.msra.gmra.mrb[0].mxu0 %vm85_vm1, %v61_v5 }
  0x40   :  { %287 = vmatpush3.bf16.msra.mxu1 %v313_v7 }
  0x41   :  { %288 = vmatprep.subr.bf16.mxu1 %v394_v0 }
  0x44   :  { %289 = vmatpush3.bf16.msra.mxu1 %v314_v8 }
  0x45   :  { %290 = vmatprep.subr.bf16.mxu1 %v394_v0 }
  0x48   :  { %291 = vmatpush3.bf16.msra.mxu1 %v315_v9 }
  0x49   :  { %292 = vmatprep.subr.bf16.mxu1 %v394_v0 }
  0x4c   :  { %293 = vmatpush3.bf16.msra.mxu1 %v316_v10 }
  0x4d   :  { %294 = vmatprep.subr.bf16.mxu1 %v394_v0 }
  0x50   :  { %295 = vmatpush3.bf16.msra.mxu1 %v317_v11 }
  0x51   :  { %296 = vmatprep.subr.bf16.mxu1 %v394_v0 }
  0x54   :  { %297 = vmatpush3.bf16.msra.mxu1 %v318_v12 }
 0x112   :  { %v123_v14 = vpop.f32.mrb[0].mxu0 }
 0x113   :  { %v124_v15 = vadd.f32 %v249_v13, %v123_v14  ;;  %v280_v16 = vpop.f32.mrb[1].mxu0 }
 0x114   :  { %v126_v17 = vpop.f32.mrb[2].mxu0 }
 0x115   :  { %v129_v18 = vmax.f32 %v124_v15, 0.0  ;;  %v281_v19 = vpop.f32.mrb[3].mxu0 }
 0x117   :  { %v130_v20 = vpack.c.bf16 %v129_v18, %v129_v18 }
 0x119   :  { %299 = vmatmul.mubr.bf16.vlgmr.msra.gmra.mrb[0].mxu1 %v130_v20 }
 0x1ec   :  { %v236_v22 = vpop.f32.mrb[0].mxu1 }
 0x1ed   :  { %v237_v23 = vadd.f32 %v253_v21, %v236_v22  ;;  %v300_v24 = vpop.f32.mrb[1].mxu1 }
 0x1ee   :  { %v239_v25 = vpop.f32.mrb[2].mxu1 }
 0x1ef   :  { %242 = vst [vmem:[%s482_s5] sm:$0xff] %v237_v23  ;;  %v301_v26 = vpop.f32.mrb[3].mxu1 }
 0x1f0   :  { %247 = vsyncpa [#allocation3], 1 }
 0x1f1   :  { %248 = vsyncpa [#allocation5], 1 }

</bundles_post_ra>
